<compile_context>
chip_gen: v5e
topology: v5e:2x2
jax: 0.10.0
libtpu: 0.0.40
codegen_flags: <defaults>
</compile_context>

<pallas_src>
import functools

import jax
import jax.numpy as jnp
from jax.experimental import pallas as pl
from jax.experimental.pallas import tpu as pltpu

LANE = 128     # lane width of a vreg
SUBLANE = 8    # sublane width of a vreg (f32)


def _round_up(x, m):
    return ((x + m - 1) // m) * m


def _cdiv(a, b):
    return -(-a // b)


def _choose_batch_tile(b):
    """Adaptive batch tile: multiple of 8, <= 512 rows, low padding waste,
    and >= 2 tiles once B > 128 (keeps both v7x TensorCores busy)."""
    b8 = _round_up(b, SUBLANE)
    if b8 <= 128:
        return b8                           # single tile, zero/near-zero padding
    n_tiles = max(2, _cdiv(b8, 512))        # cap tile at 512 rows, want >= 2 tiles
    return _round_up(_cdiv(b8, n_tiles), SUBLANE)


def _q_network_kernel(x_ref, w_ref, b_ref, out_ref, *, k_sizes, action_size):
    """Fused 4-layer MLP forward on one batch tile.

    x_ref  : [TB, state_size]   raw states (no lane padding)
    w_ref  : [4, K_max, 128]    bf16 weights, layer i occupies rows [:k_sizes[i]]
    b_ref  : [4, 128]           f32 biases (zero-padded lanes)
    out_ref: [TB, action_size]  f32 Q-values
    """
    h = x_ref[...].astype(jnp.bfloat16)
    for layer, k in enumerate(k_sizes):
        w = w_ref[layer, :k, :]                     # static slice -> cheap view
        b = b_ref[layer:layer + 1, :]               # [1, 128] f32, broadcasts
        # bf16 x bf16 on the MXU, f32 accumulation; bias-add / ReLU in f32 (VPU).
        h = jnp.dot(h, w, preferred_element_type=jnp.float32) + b
        if layer < 3:
            h = jnp.maximum(h, 0.0)
            # Next layer only contracts over its real fan_in -> fewer MXU passes.
            h = h[:, :k_sizes[layer + 1]].astype(jnp.bfloat16)
    out_ref[...] = h[:, :action_size].astype(out_ref.dtype)


def pack_qnetwork_params(params):
    """Packs w1..w4 into one bf16 slab [4, K_max, 128] and b1..b4 into an f32
    [4, 128] array.  Call once at setup."""
    state_size = params["w1"].shape[0]
    action_size = params["w4"].shape[1]
    assert action_size <= LANE and all(
        params[f"w{i}"].shape[1] <= LANE for i in range(1, 5)
    )
    k_sizes = (state_size, 64, 32, 16)
    rows = _round_up(max(k_sizes), 2 * SUBLANE)     # bf16 sublane-pack friendly

    w_packed = jnp.zeros((4, rows, LANE), jnp.bfloat16)
    b_packed = jnp.zeros((4, LANE), jnp.float32)
    for i in range(4):
        w = params[f"w{i + 1}"]                     # [in, out]
        b = params[f"b{i + 1}"].reshape(-1)         # [out]
        w_packed = w_packed.at[i, : w.shape[0], : w.shape[1]].set(
            w.astype(jnp.bfloat16))
        b_packed = b_packed.at[i, : b.shape[0]].set(b.astype(jnp.float32))
    return w_packed, b_packed


def q_standard_network_forward(state, w_packed, b_packed, action_size):
    """Runs the fused QStandardNetwork forward pass as one Pallas kernel.

    state    : [B, state_size] float32
    w_packed : [4, K_max, 128] bfloat16 slab from pack_qnetwork_params
    b_packed : [4, 128]        float32 biases
    returns  : [B, action_size] float32 Q-values
    """
    B, state_size = state.shape
    _, rows, dp = w_packed.shape
    k_sizes = (state_size, 64, 32, 16)
    assert max(k_sizes) <= rows

    tb = _choose_batch_tile(B)
    b_pad = _round_up(B, tb)
    x = state
    if b_pad != B:                                  # tiny batch-only padding
        x = jnp.zeros((b_pad, state_size), state.dtype).at[:B].set(state)

    grid = (b_pad // tb,)
    kernel = functools.partial(
        _q_network_kernel, k_sizes=k_sizes, action_size=action_size)

    out_widths = (64, 32, 16, action_size)
    flops = 2 * b_pad * sum(k * n for k, n in zip(k_sizes, out_widths))
    bytes_accessed = (b_pad * state_size * 4 + b_pad * action_size * 4
                      + int(w_packed.nbytes) + int(b_packed.nbytes))

    out = pl.pallas_call(
        kernel,
        out_shape=jax.ShapeDtypeStruct((b_pad, action_size), jnp.float32),
        grid=grid,
        in_specs=[
            # raw states: tiled along the (parallel) batch grid axis
            pl.BlockSpec((tb, state_size), lambda i: (i, 0)),
            # packed weights / biases: constant index_map -> DMA'd once,
            # resident in VMEM across all batch tiles
            pl.BlockSpec((4, rows, dp), lambda i: (0, 0, 0)),
            pl.BlockSpec((4, dp), lambda i: (0, 0)),
        ],
        out_specs=pl.BlockSpec((tb, action_size), lambda i: (i, 0)),
        compiler_params=pltpu.CompilerParams(
            dimension_semantics=("parallel",)),
        cost_estimate=pl.CostEstimate(
            flops=flops, transcendentals=0, bytes_accessed=bytes_accessed),
    )(x, w_packed, b_packed)

    return out[:B] if b_pad != B else out
    # TODO(synk): for v5e inference, optionally fuse the downstream argmax/max
    # into the kernel so the output is a single column per row.


def init_params(key, state_size, action_size):
    """Deterministic PyTorch-nn.Linear-style init: U(-1/sqrt(fan_in), +1/sqrt(fan_in))."""
    sizes = [(state_size, 64), (64, 32), (32, 16), (16, action_size)]
    params = {}
    for i, (fan_in, fan_out) in enumerate(sizes, start=1):
        key, kw, kb = jax.random.split(key, 3)
        bound = 1.0 / jnp.sqrt(jnp.float32(fan_in))
        params[f"w{i}"] = jax.random.uniform(
            kw, (fan_in, fan_out), jnp.float32, minval=-bound, maxval=bound)
        params[f"b{i}"] = jax.random.uniform(
            kb, (1, fan_out), jnp.float32, minval=-bound, maxval=bound)
    return params


def reference_forward(state, params):
    """Plain-JAX f32 reference (module semantics)."""
    x = jnp.maximum(state @ params["w1"] + params["b1"], 0.0)
    x = jnp.maximum(x @ params["w2"] + params["b2"], 0.0)
    x = jnp.maximum(x @ params["w3"] + params["b3"], 0.0)
    return x @ params["w4"] + params["b4"]


def reference_forward_bf16(state, params):
    """Emulates the kernel's numerics: bf16 matmul operands, f32 accumulation,
    f32 bias-add / ReLU."""
    def mm(a, w):
        return jnp.dot(a.astype(jnp.bfloat16), w.astype(jnp.bfloat16),
                       preferred_element_type=jnp.float32)
    x = jnp.maximum(mm(state, params["w1"]) + params["b1"], 0.0)
    x = jnp.maximum(mm(x, params["w2"]) + params["b2"], 0.0)
    x = jnp.maximum(mm(x, params["w3"]) + params["b3"], 0.0)
    return mm(x, params["w4"]) + params["b4"]


if __name__ == "__main__":
    key = jax.random.PRNGKey(0)
    state_size = 8
    action_size = 4
    batch = 8

    key, k_state = jax.random.split(key)
    state = jax.random.normal(k_state, (batch, state_size), jnp.float32)
    params = init_params(key, state_size, action_size)

    w_packed, b_packed = pack_qnetwork_params(params)   # one-time packing

    out = q_standard_network_forward(state, w_packed, b_packed, action_size)
    out = jax.block_until_ready(out)
    assert out.shape == (batch, action_size)

    # Tight check against a reference with matching bf16-matmul numerics.
    ref_bf16 = reference_forward_bf16(state, params)
    err_tight = float(jnp.max(jnp.abs(out - ref_bf16)))
    assert err_tight < 2e-3, err_tight

    # Looser check against the full-f32 PyTorch-equivalent reference
    # (bf16 matmul operands with f32 accumulation -> small, bounded drift).
    ref_f32 = reference_forward(state, params)
    err_loose = float(jnp.max(jnp.abs(out - ref_f32)))
    assert err_loose < 2e-2, err_loose

    print("KERNEL_OK")
</pallas_src>

<mosaic_0001>
module attributes {stable_mosaic.version = 11 : i64} {
  func.func @_q_network_kernel(%arg0: i32, %arg1: memref<8x8xf32, #tpu.memory_space<vmem>>, %arg2: memref<4x64x128xbf16, #tpu.memory_space<vmem>>, %arg3: memref<4x128xf32, #tpu.memory_space<vmem>>, %arg4: memref<8x4xf32, #tpu.memory_space<vmem>>) attributes {dimension_semantics = [#tpu.dimension_semantics<parallel>], iteration_bounds = array<i64: 1>, scalar_prefetch = 0 : i64, scratch_operands = 0 : i64, tpu.core_type = #tpu.core_type<tc>, window_params = [{transform_indices = @transform_0, window_bounds = array<i64: 8, 8>}, {pipeline_mode = #tpu.pipeline_mode<synchronous>, transform_indices = @transform_1, window_bounds = array<i64: 4, 64, 128>}, {pipeline_mode = #tpu.pipeline_mode<synchronous>, transform_indices = @transform_2, window_bounds = array<i64: 4, 128>}, {transform_indices = @transform_3, window_bounds = array<i64: 8, 4>}]} {
    %c0 = arith.constant 0 : index
    %c0_0 = arith.constant 0 : index
    %0 = vector.load %arg1[%c0, %c0_0] : memref<8x8xf32, #tpu.memory_space<vmem>>, vector<8x8xf32>
    %1 = arith.truncf %0 : vector<8x8xf32> to vector<8x8xbf16>
    %c0_1 = arith.constant 0 : index
    %c0_2 = arith.constant 0 : index
    %c0_3 = arith.constant 0 : index
    %2 = vector.load %arg2[%c0_1, %c0_2, %c0_3] : memref<4x64x128xbf16, #tpu.memory_space<vmem>>, vector<1x8x128xbf16>
    %3 = vector.shape_cast %2 : vector<1x8x128xbf16> to vector<8x128xbf16>
    %c0_4 = arith.constant 0 : index
    %c0_5 = arith.constant 0 : index
    %4 = vector.load %arg3[%c0_4, %c0_5] : memref<4x128xf32, #tpu.memory_space<vmem>>, vector<1x128xf32>
    %cst = arith.constant dense<0.000000e+00> : vector<8x128xf32>
    %5 = tpu.matmul %1, %3, %cst {dimension_numbers = #tpu.dot_dimension_numbers<[1], [0], [0], [1], [0, 0, 1, 1], [], []>} : vector<8x8xbf16>, vector<8x128xbf16>, vector<8x128xf32> -> vector<8x128xf32>
    %6 = vector.broadcast %4 : vector<1x128xf32> to vector<8x128xf32>
    %7 = arith.addf %5, %6 : vector<8x128xf32>
    %cst_6 = arith.constant 0.000000e+00 : f32
    %8 = vector.broadcast %cst_6 : f32 to vector<8x128xf32>
    %9 = arith.maximumf %7, %8 : vector<8x128xf32>
    %10 = vector.extract_strided_slice %9 {offsets = [0, 0], sizes = [8, 64], strides = [1, 1]} : vector<8x128xf32> to vector<8x64xf32>
    %11 = arith.truncf %10 : vector<8x64xf32> to vector<8x64xbf16>
    %c1 = arith.constant 1 : index
    %c0_7 = arith.constant 0 : index
    %c0_8 = arith.constant 0 : index
    %12 = vector.load %arg2[%c1, %c0_7, %c0_8] : memref<4x64x128xbf16, #tpu.memory_space<vmem>>, vector<1x64x128xbf16>
    %13 = vector.shape_cast %12 : vector<1x64x128xbf16> to vector<64x128xbf16>
    %c1_9 = arith.constant 1 : index
    %c0_10 = arith.constant 0 : index
    %14 = vector.load %arg3[%c1_9, %c0_10] : memref<4x128xf32, #tpu.memory_space<vmem>>, vector<1x128xf32>
    %cst_11 = arith.constant dense<0.000000e+00> : vector<8x128xf32>
    %15 = tpu.matmul %11, %13, %cst_11 {dimension_numbers = #tpu.dot_dimension_numbers<[1], [0], [0], [1], [0, 0, 1, 1], [], []>} : vector<8x64xbf16>, vector<64x128xbf16>, vector<8x128xf32> -> vector<8x128xf32>
    %16 = vector.broadcast %14 : vector<1x128xf32> to vector<8x128xf32>
    %17 = arith.addf %15, %16 : vector<8x128xf32>
    %cst_12 = arith.constant 0.000000e+00 : f32
    %18 = vector.broadcast %cst_12 : f32 to vector<8x128xf32>
    %19 = arith.maximumf %17, %18 : vector<8x128xf32>
    %20 = vector.extract_strided_slice %19 {offsets = [0, 0], sizes = [8, 32], strides = [1, 1]} : vector<8x128xf32> to vector<8x32xf32>
    %21 = arith.truncf %20 : vector<8x32xf32> to vector<8x32xbf16>
    %c2 = arith.constant 2 : index
    %c0_13 = arith.constant 0 : index
    %c0_14 = arith.constant 0 : index
    %22 = vector.load %arg2[%c2, %c0_13, %c0_14] : memref<4x64x128xbf16, #tpu.memory_space<vmem>>, vector<1x32x128xbf16>
    %23 = vector.shape_cast %22 : vector<1x32x128xbf16> to vector<32x128xbf16>
    %c2_15 = arith.constant 2 : index
    %c0_16 = arith.constant 0 : index
    %24 = vector.load %arg3[%c2_15, %c0_16] : memref<4x128xf32, #tpu.memory_space<vmem>>, vector<1x128xf32>
    %cst_17 = arith.constant dense<0.000000e+00> : vector<8x128xf32>
    %25 = tpu.matmul %21, %23, %cst_17 {dimension_numbers = #tpu.dot_dimension_numbers<[1], [0], [0], [1], [0, 0, 1, 1], [], []>} : vector<8x32xbf16>, vector<32x128xbf16>, vector<8x128xf32> -> vector<8x128xf32>
    %26 = vector.broadcast %24 : vector<1x128xf32> to vector<8x128xf32>
    %27 = arith.addf %25, %26 : vector<8x128xf32>
    %cst_18 = arith.constant 0.000000e+00 : f32
    %28 = vector.broadcast %cst_18 : f32 to vector<8x128xf32>
    %29 = arith.maximumf %27, %28 : vector<8x128xf32>
    %30 = vector.extract_strided_slice %29 {offsets = [0, 0], sizes = [8, 16], strides = [1, 1]} : vector<8x128xf32> to vector<8x16xf32>
    %31 = arith.truncf %30 : vector<8x16xf32> to vector<8x16xbf16>
    %c3 = arith.constant 3 : index
    %c0_19 = arith.constant 0 : index
    %c0_20 = arith.constant 0 : index
    %32 = vector.load %arg2[%c3, %c0_19, %c0_20] : memref<4x64x128xbf16, #tpu.memory_space<vmem>>, vector<1x16x128xbf16>
    %33 = vector.shape_cast %32 : vector<1x16x128xbf16> to vector<16x128xbf16>
    %c3_21 = arith.constant 3 : index
    %c0_22 = arith.constant 0 : index
    %34 = vector.load %arg3[%c3_21, %c0_22] : memref<4x128xf32, #tpu.memory_space<vmem>>, vector<1x128xf32>
    %cst_23 = arith.constant dense<0.000000e+00> : vector<8x128xf32>
    %35 = tpu.matmul %31, %33, %cst_23 {dimension_numbers = #tpu.dot_dimension_numbers<[1], [0], [0], [1], [0, 0, 1, 1], [], []>} : vector<8x16xbf16>, vector<16x128xbf16>, vector<8x128xf32> -> vector<8x128xf32>
    %36 = vector.broadcast %34 : vector<1x128xf32> to vector<8x128xf32>
    %37 = arith.addf %35, %36 : vector<8x128xf32>
    %38 = vector.extract_strided_slice %37 {offsets = [0, 0], sizes = [8, 4], strides = [1, 1]} : vector<8x128xf32> to vector<8x4xf32>
    %c0_24 = arith.constant 0 : index
    %c0_25 = arith.constant 0 : index
    %39 = vector.load %arg4[%c0_24, %c0_25] : memref<8x4xf32, #tpu.memory_space<vmem>>, vector<8x4xf32>
    tpu.vector_store %arg4[%c0_24, %c0_25], %38 {strides = array<i32>} : memref<8x4xf32, #tpu.memory_space<vmem>>, vector<8x4xf32>,
    return
  }
  func.func @transform_0(%arg0: i32) -> (i32, i32) {
    %c0_i32 = arith.constant 0 : i32
    %c0_i32_0 = arith.constant 0 : i32
    return %arg0, %c0_i32 : i32, i32
  }
  func.func @transform_1(%arg0: i32) -> (i32, i32, i32) {
    %c0_i32 = arith.constant 0 : i32
    %c0_i32_0 = arith.constant 0 : i32
    %c0_i32_1 = arith.constant 0 : i32
    %c0_i32_2 = arith.constant 0 : i32
    return %c0_i32, %c0_i32_0, %c0_i32_1 : i32, i32, i32
  }
  func.func @transform_2(%arg0: i32) -> (i32, i32) {
    %c0_i32 = arith.constant 0 : i32
    %c0_i32_0 = arith.constant 0 : i32
    %c0_i32_1 = arith.constant 0 : i32
    return %c0_i32, %c0_i32_0 : i32, i32
  }
  func.func @transform_3(%arg0: i32) -> (i32, i32) {
    %c0_i32 = arith.constant 0 : i32
    %c0_i32_0 = arith.constant 0 : i32
    return %arg0, %c0_i32 : i32, i32
  }
}

</mosaic_0001>

<bundles_post_ra>
// kernel: tpu_custom_call.1
= control target key start
LH: loop header
LB: loop body
LE: loop exit
PB: predicated region body
PF: predicated region fallthrough
CT: control target
= control target key end

     0   :  { %8 = vsyncpa [#allocation3], 0  ;;  %s375_s0 = inlined_call_operand.hbm [shape: f32[8,8], index: 0, kind: input, shape index: {}]   ;;  %s376_s1 = inlined_call_operand.hbm [shape: bf16[4,64,128], index: 1, kind: input, shape index: {}]   ;;  %s377_s2 = inlined_call_operand.hbm [shape: f32[4,128], index: 2, kind: input, shape index: {}]   ;;  %s378_s3 = inlined_call_operand.vmem [shape: f32[8,4], index: 3, kind: output, shape index: {}]  }
   0x1   :  { %9 = vsyncpa [#allocation5], 0  ;;  %s25_s14 = sshll.u32 %s376_s1, 4  ;;  %s338_s15 = smov [#allocation4]   ;;  %s26_s14 = int_to_ptr.hbm [resolvable:$true] %s25_s14 }
   0x2   :  { %s27_s16 = sshll.u32 %s338_s15, 4  ;;  %s15_s19 = sshll.u32 %s375_s0, 4  ;;  %s28_s16 = int_to_ptr.vmem [resolvable:$true] %s27_s16  ;;  %s16_s19 = int_to_ptr.hbm [resolvable:$true] %s15_s19 }
   0x3   :  { %s339_s20 = smov 64   ;;  %s340_s21 = smov 4  }
   0x4   :  { %33 = dma.hbm_to_vmem [thread:$0]  %s26_s14, 2048, %s28_s16, [#allocation5], %s339_s20, %s339_s20, %s340_s21  }
   0x5   :  { %s341_s22 = smov [#allocation2]   ;;  %s39_s26 = sshll.u32 %s377_s2, 4  ;;  %s40_s26 = int_to_ptr.hbm [resolvable:$true] %s39_s26 }
   0x6   :  { %s17_s23 = sshll.u32 %s341_s22, 4  ;;  %s342_s1 = smov [#allocation6]   ;;  %s18_s23 = int_to_ptr.vmem [resolvable:$true] %s17_s23 }
   0x7   :  { %20 = dma.hbm_to_vmem [thread:$0]  %s16_s19, 128, %s18_s23, [#allocation3]  }
   0x8   :  { %s41_s27 = sshll.u32 %s342_s1, 4  ;;  %s42_s27 = int_to_ptr.vmem [resolvable:$true] %s41_s27 }
   0x9   :  { %44 = dma.hbm_to_vmem [thread:$0]  %s40_s26, 64, %s42_s27, [#allocation5]  }
   0xa   :  { %334 = dma.done.wait [#allocation3], 128  }
   0xb   :  { %335 = vsyncadd [#allocation3], 4294967168 }
   0xc   :  { %336 = dma.done.wait [#allocation5], 2112  }
   0xd   :  { %337 = vsyncadd [#allocation5], 4294965184  ;;  %vm67_vm0 = vcmask 1043456   ;;  %v60_v0 = vld [vmem:[#allocation4] sm:$0xf]  ;;  %v58_v1 = vld [vmem:[#allocation2] sm:$0xff] }
   0xe   :  { %v249_v2 = vld [vmem:[#allocation4 + $0x38] sm:$0xff]  ;;  %v69_v3 = vsel %vm67_vm0, %v60_v0, 0  ;;  %v59_v4 = vpack.c.bf16 %v58_v1, %v58_v1  ;;  %vm63_vm1 = vcmask 64512   ;;  %v248_v5 = vld [vmem:[#allocation4 + $0x30] sm:$0xff]  ;;  %v247_v6 = vld [vmem:[#allocation4 + $0x28] sm:$0xff]  ;;  %vm121_vm2 = vcmask 523264  }
   0xf   :  { %78 = vmatpush.bf16.msra.mxu0 %v69_v3  ;;  %129 = vmatpush.bf16.msra.mxu1 %v249_v2  ;;  %v246_v7 = vld [vmem:[#allocation4 + $0x20] sm:$0xff]  ;;  %v251_v14 = vld [vmem:[#allocation4 + $0x48] sm:$0xff]  ;;  %vm159_vm3 = vcmask 261120   ;;  %vm189_vm4 = vcmask 130048   ;;  %vm206_vm5 = vcmask 31744  }
  0x10   :  { %v258_v8 = vld [vmem:[#allocation6] ss:$0 sm:$0xff]  ;;  %169 = vmatpush.bf16.msra.mxu2 %v251_v14  ;;  %v259_v16 = vld [vmem:[#allocation6 + $0x1] ss:$0 sm:$0xff]  ;;  %v260_v23 = vld [vmem:[#allocation6 + $0x2] ss:$0 sm:$0xff] }
  0x11   :  { %v250_v15 = vld [vmem:[#allocation4 + $0x40] sm:$0xff] }
  0x12   :  { %214 = vmatmul.msk.bf16.vlgmr.msra.gmra.mxu0 %vm63_vm1, %v59_v4  ;;  %v252_v22 = vld [vmem:[#allocation4 + $0x60] sm:$0xff] }
  0x13   :  { %130 = vmatpush.bf16.msra.mxu1 %v248_v5  ;;  %200 = vmatpush.bf16.msra.mxu3 %v252_v22  ;;  %v261_v29 = vld [vmem:[#allocation6 + $0x3] ss:$0 sm:$0xff] }
  0x14   :  { %170 = vmatpush.bf16.msra.mxu2 %v250_v15 }
  0x17   :  { %131 = vmatpush.bf16.msra.mxu1 %v247_v6 }
  0x1b   :  { %132 = vmatpush.bf16.msra.mxu1 %v246_v7 }
  0x8f   :  { %v80_v9 = vpop.f32.mrf.mxu0 }
  0x90   :  { %v81_v10 = vadd.f32 %v258_v8, %v80_v9 }
  0x92   :  { %v84_v11 = vmax.f32 %v81_v10, 0.0 }
  0x94   :  { %v85_v12 = vpack.c.bf16 %v84_v11, %v84_v11 }
  0x96   :  { %231 = vmatmul.msk.bf16.vlgmr.msra.gmra.mxu1 %vm121_vm2, %v85_v12 }
  0x97   :  { %v82_v13 = vpop.f32.mrf.mxu0 }
 0x113   :  { %v134_v17 = vpop.f32.mrf.mxu1 }
 0x114   :  { %v135_v18 = vadd.f32 %v259_v16, %v134_v17 }
 0x116   :  { %v138_v19 = vmax.f32 %v135_v18, 0.0 }
 0x118   :  { %v139_v20 = vpack.c.bf16 %v138_v19, %v138_v19 }
 0x11a   :  { %240 = vmatmul.msk.bf16.vlgmr.msra.gmra.mxu2 %vm159_vm3, %v139_v20 }
 0x11b   :  { %v136_v21 = vpop.f32.mrf.mxu1 }
 0x19d   :  { %v172_v24 = vpop.f32.mrf.mxu2 }
 0x19e   :  { %v173_v25 = vadd.f32 %v260_v23, %v172_v24 }
 0x1a0   :  { %v176_v26 = vmax.f32 %v173_v25, 0.0 }
 0x1a2   :  { %v177_v27 = vpack.c.bf16 %v176_v26, %v176_v26 }
 0x1a4   :  { %245 = vmatmul.msk.bf16.vlgmr.msra.gmra.mxu3 %vm189_vm4, %v177_v27 }
 0x1a5   :  { %v174_v28 = vpop.f32.mrf.mxu2 }
 0x227   :  { %v202_v30 = vpop.f32.mrf.mxu3 }
 0x228   :  { %v203_v31 = vadd.f32 %v261_v29, %v202_v30 }
 0x22a   :  { %207 = vst.msk [vmem:[%s378_s3] sm:$0xff] %vm206_vm5, %v203_v31 }
 0x22f   :  { %v204_v32 = vpop.f32.mrf.mxu3 }
 0x230   :  { %212 = vsyncpa [#allocation3], 1 }
 0x231   :  { %213 = vsyncpa [#allocation5], 1 }

</bundles_post_ra>
